<compile_context>
chip_gen: v5e
topology: v5e:2x2
jax: 0.10.0
libtpu: 0.0.40
codegen_flags: <defaults>
</compile_context>

<pallas_src>
import functools

import jax
import jax.numpy as jnp
from jax.experimental import pallas as pl
from jax.experimental.pallas import tpu as pltpu


def _round_up(a: int, b: int) -> int:
    return (a + b - 1) // b * b


def _cdiv(a: int, b: int) -> int:
    return (a + b - 1) // b


def _card_embedding_kernel(x_ref, hi_ref, lo_ref, out_ref, *,
                           num_cards: int, pack: int, dim_blk: int):
    """One batch tile.

    x_ref   : (TBp, pack * num_cards) int32 -- `pack` logical rows per packed row.
    hi_ref  : (vocab_pad, dim_blk) bf16     -- high bf16 part of the fused table.
    lo_ref  : (vocab_pad, dim_blk) bf16     -- low (residual) bf16 part.
    out_ref : (TBp, pack * dim_blk) f32     -- lane-dense packed output.
    """
    x = x_ref[...]                                        # (TBp, pack*num_cards)
    tbp = x.shape[0]
    vocab_pad = hi_ref.shape[0]
    hi = hi_ref[...]
    lo = lo_ref[...]

    iota_v = jax.lax.broadcasted_iota(jnp.int32, (tbp, vocab_pad), 1)

    # One independent histogram + matmul per packed column group j: only one
    # (TBp, vocab_pad) counts block is live at a time (bounded vreg pressure).
    for j in range(pack):
        base = j * num_cards
        # Integer histogram; -1 (empty slot) never matches iota_v >= 0, so no
        # extra validity mask is needed.
        counts = (iota_v == x[:, base:base + 1]).astype(jnp.int32)
        for k in range(1, num_cards):
            xk = x[:, base + k:base + k + 1]              # (TBp, 1) int32
            counts = counts + (iota_v == xk).astype(jnp.int32)
        # Single convert after the loop; counts <= num_cards are exact in bf16.
        counts_bf = counts.astype(jnp.float32).astype(jnp.bfloat16)
        # bf16 x bf16 -> f32 MXU matmuls; hi/lo split keeps ~f32-level accuracy.
        res = (jnp.dot(counts_bf, hi, preferred_element_type=jnp.float32)
               + jnp.dot(counts_bf, lo, preferred_element_type=jnp.float32))
        out_ref[:, j * dim_blk:(j + 1) * dim_blk] = res


def card_embedding(x, card_tab, rank_tab, suit_tab, *, n_suits: int):
    """Pallas equivalent of CardEmbedding.forward.

    x        : (batch, num_cards) int card ids, -1 marks an empty slot.
    card_tab : (n_ranks * n_suits, dim) f32
    rank_tab : (n_ranks, dim) f32
    suit_tab : (n_suits, dim) f32
    returns  : (batch, dim) f32

    For best performance, call this under the caller's jit so the fused-table
    preparation below is hoisted / constant-folded across calls.
    """
    batch, num_cards = x.shape
    vocab, dim = card_tab.shape

    # ---- Fuse the three tables once (cheap, (vocab, dim)); split into bf16 hi/lo.
    ids = jnp.arange(vocab, dtype=jnp.int32)
    fused = (card_tab.astype(jnp.float32)
             + rank_tab[ids // n_suits].astype(jnp.float32)
             + suit_tab[ids % n_suits].astype(jnp.float32))

    # ---- Output packing: pack `128 // dim` logical rows per 128-lane output row.
    if dim < 128 and 128 % dim == 0:
        pack, dim_blk = 128 // dim, dim          # packed path (no output padding)
    else:
        pack, dim_blk = 1, _round_up(dim, 128)   # fallback: pad dim to lane multiple

    vocab_pad = _round_up(vocab, 128)
    fused_pad = jnp.zeros((vocab_pad, dim_blk), jnp.float32)
    fused_pad = fused_pad.at[:vocab, :dim].set(fused)
    hi_tab = fused_pad.astype(jnp.bfloat16)
    lo_tab = (fused_pad - hi_tab.astype(jnp.float32)).astype(jnp.bfloat16)

    # ---- Batch tiling: up to 128 packed rows (= 128*pack logical rows) per grid
    # step, sized to minimize round-up waste.  Batches larger than one tile
    # always yield >= 2 grid steps (both v7x TensorCores engaged).
    unit = 8 * pack                              # one sublane row of packed output
    cap = 128 * pack                             # logical-row cap per grid step
    batch_u = _round_up(batch, unit)
    n_steps = _cdiv(batch_u, cap)
    tb = _round_up(_cdiv(batch_u, n_steps), unit)   # logical rows per grid step
    batch_pad = tb * n_steps
    tbp = tb // pack                             # packed rows per grid step

    x_i32 = x.astype(jnp.int32)
    if batch_pad != batch:                       # skip the pad copy when aligned
        x_i32 = jnp.full((batch_pad, num_cards), -1, dtype=jnp.int32).at[:batch].set(x_i32)
    x_packed = x_i32.reshape(batch_pad // pack, pack * num_cards)   # free view

    kernel = functools.partial(_card_embedding_kernel,
                               num_cards=num_cards, pack=pack, dim_blk=dim_blk)

    out = pl.pallas_call(
        kernel,
        out_shape=jax.ShapeDtypeStruct((batch_pad // pack, pack * dim_blk),
                                       jnp.float32),
        grid=(n_steps,),
        in_specs=[
            # Packed ids tile: (TBp, pack*num_cards); last dim = full array dim.
            pl.BlockSpec((tbp, pack * num_cards), lambda i: (i, 0)),
            # Fused tables: constant index_map -> VMEM-resident across steps.
            pl.BlockSpec((vocab_pad, dim_blk), lambda i: (0, 0)),
            pl.BlockSpec((vocab_pad, dim_blk), lambda i: (0, 0)),
        ],
        out_specs=pl.BlockSpec((tbp, pack * dim_blk), lambda i: (i, 0)),
        compiler_params=pltpu.CompilerParams(
            dimension_semantics=("parallel",)),  # shard batch tiles across TCs
    )(x_packed, hi_tab, lo_tab)

    # Free reshape back to logical rows; drop batch padding (and dim padding
    # only on the non-packed fallback path).
    return out.reshape(batch_pad, dim_blk)[:batch, :dim]


def _reference(x, card_tab, rank_tab, suit_tab, n_suits):
    """Pure-JAX (f32) replica of the PyTorch forward, for correctness checking."""
    batch, num_cards = x.shape
    xf = x.reshape(-1)
    valid = (xf >= 0).astype(jnp.float32)
    xc = jnp.maximum(xf, 0)
    embs = card_tab[xc] + rank_tab[xc // n_suits] + suit_tab[xc % n_suits]
    embs = embs * valid[:, None]
    return embs.reshape(batch, num_cards, -1).sum(axis=1)


if __name__ == "__main__":
    n_suits, n_ranks, dim = 4, 13, 32
    vocab = n_suits * n_ranks
    num_cards = 8

    key = jax.random.PRNGKey(0)
    k_card, k_rank, k_suit, k_x1, k_x2 = jax.random.split(key, 5)

    # Deterministic synthetic parameters (nn.Embedding default ~ N(0, 1)).
    card_tab = jax.random.normal(k_card, (vocab, dim), dtype=jnp.float32)
    rank_tab = jax.random.normal(k_rank, (n_ranks, dim), dtype=jnp.float32)
    suit_tab = jax.random.normal(k_suit, (n_suits, dim), dtype=jnp.float32)

    # The bf16 hi/lo table split keeps errors at the ~1e-4 absolute level vs the
    # pure-f32 reference, so compare with a 1e-3 tolerance.
    TOL = 1e-3

    # Small shape (single grid step, batch padding + row packing exercised).
    x_small = jax.random.randint(k_x1, (2, num_cards), minval=-1, maxval=vocab,
                                 dtype=jnp.int32)
    out_small = jax.block_until_ready(
        card_embedding(x_small, card_tab, rank_tab, suit_tab, n_suits=n_suits))
    ref_small = _reference(x_small, card_tab, rank_tab, suit_tab, n_suits)
    assert out_small.shape == (2, dim)
    assert jnp.allclose(out_small, ref_small, atol=TOL, rtol=TOL)

    # Larger batch: multi-step grid (>= 2 "parallel" tiles) + non-aligned batch.
    x_big = jax.random.randint(k_x2, (1234, num_cards), minval=-1, maxval=vocab,
                               dtype=jnp.int32)
    out_big = jax.block_until_ready(
        card_embedding(x_big, card_tab, rank_tab, suit_tab, n_suits=n_suits))
    ref_big = _reference(x_big, card_tab, rank_tab, suit_tab, n_suits)
    assert out_big.shape == (1234, dim)
    assert jnp.allclose(out_big, ref_big, atol=TOL, rtol=TOL)

    print("KERNEL_OK")
</pallas_src>

<mosaic_0001>
module attributes {stable_mosaic.version = 11 : i64} {
  func.func @_card_embedding_kernel(%arg0: i32, %arg1: memref<8x32xi32, #tpu.memory_space<vmem>>, %arg2: memref<128x32xbf16, #tpu.memory_space<vmem>>, %arg3: memref<128x32xbf16, #tpu.memory_space<vmem>>, %arg4: memref<8x128xf32, #tpu.memory_space<vmem>>) attributes {dimension_semantics = [#tpu.dimension_semantics<parallel>], iteration_bounds = array<i64: 1>, scalar_prefetch = 0 : i64, scratch_operands = 0 : i64, tpu.core_type = #tpu.core_type<tc>, window_params = [{transform_indices = @transform_0, window_bounds = array<i64: 8, 32>}, {pipeline_mode = #tpu.pipeline_mode<synchronous>, transform_indices = @transform_1, window_bounds = array<i64: 128, 32>}, {pipeline_mode = #tpu.pipeline_mode<synchronous>, transform_indices = @transform_2, window_bounds = array<i64: 128, 32>}, {transform_indices = @transform_3, window_bounds = array<i64: 8, 128>}]} {
    %c0 = arith.constant 0 : index
    %c0_0 = arith.constant 0 : index
    %0 = vector.load %arg1[%c0, %c0_0] : memref<8x32xi32, #tpu.memory_space<vmem>>, vector<8x32xi32>
    %c0_1 = arith.constant 0 : index
    %c0_2 = arith.constant 0 : index
    %1 = vector.load %arg2[%c0_1, %c0_2] : memref<128x32xbf16, #tpu.memory_space<vmem>>, vector<128x32xbf16>
    %c0_3 = arith.constant 0 : index
    %c0_4 = arith.constant 0 : index
    %2 = vector.load %arg3[%c0_3, %c0_4] : memref<128x32xbf16, #tpu.memory_space<vmem>>, vector<128x32xbf16>
    %3 = tpu.iota {dimensions = array<i32: 1>} : vector<8x128xi32>
    %4 = vector.extract_strided_slice %0 {offsets = [0, 0], sizes = [8, 1], strides = [1, 1]} : vector<8x32xi32> to vector<8x1xi32>
    %5 = vector.broadcast %4 : vector<8x1xi32> to vector<8x128xi32>
    %6 = arith.cmpi eq, %3, %5 : vector<8x128xi32>
    %7 = arith.extui %6 : vector<8x128xi1> to vector<8x128xi32>
    %8 = vector.extract_strided_slice %0 {offsets = [0, 1], sizes = [8, 1], strides = [1, 1]} : vector<8x32xi32> to vector<8x1xi32>
    %9 = vector.broadcast %8 : vector<8x1xi32> to vector<8x128xi32>
    %10 = arith.cmpi eq, %3, %9 : vector<8x128xi32>
    %11 = arith.extui %10 : vector<8x128xi1> to vector<8x128xi32>
    %12 = arith.addi %7, %11 : vector<8x128xi32>
    %13 = vector.extract_strided_slice %0 {offsets = [0, 2], sizes = [8, 1], strides = [1, 1]} : vector<8x32xi32> to vector<8x1xi32>
    %14 = vector.broadcast %13 : vector<8x1xi32> to vector<8x128xi32>
    %15 = arith.cmpi eq, %3, %14 : vector<8x128xi32>
    %16 = arith.extui %15 : vector<8x128xi1> to vector<8x128xi32>
    %17 = arith.addi %12, %16 : vector<8x128xi32>
    %18 = vector.extract_strided_slice %0 {offsets = [0, 3], sizes = [8, 1], strides = [1, 1]} : vector<8x32xi32> to vector<8x1xi32>
    %19 = vector.broadcast %18 : vector<8x1xi32> to vector<8x128xi32>
    %20 = arith.cmpi eq, %3, %19 : vector<8x128xi32>
    %21 = arith.extui %20 : vector<8x128xi1> to vector<8x128xi32>
    %22 = arith.addi %17, %21 : vector<8x128xi32>
    %23 = vector.extract_strided_slice %0 {offsets = [0, 4], sizes = [8, 1], strides = [1, 1]} : vector<8x32xi32> to vector<8x1xi32>
    %24 = vector.broadcast %23 : vector<8x1xi32> to vector<8x128xi32>
    %25 = arith.cmpi eq, %3, %24 : vector<8x128xi32>
    %26 = arith.extui %25 : vector<8x128xi1> to vector<8x128xi32>
    %27 = arith.addi %22, %26 : vector<8x128xi32>
    %28 = vector.extract_strided_slice %0 {offsets = [0, 5], sizes = [8, 1], strides = [1, 1]} : vector<8x32xi32> to vector<8x1xi32>
    %29 = vector.broadcast %28 : vector<8x1xi32> to vector<8x128xi32>
    %30 = arith.cmpi eq, %3, %29 : vector<8x128xi32>
    %31 = arith.extui %30 : vector<8x128xi1> to vector<8x128xi32>
    %32 = arith.addi %27, %31 : vector<8x128xi32>
    %33 = vector.extract_strided_slice %0 {offsets = [0, 6], sizes = [8, 1], strides = [1, 1]} : vector<8x32xi32> to vector<8x1xi32>
    %34 = vector.broadcast %33 : vector<8x1xi32> to vector<8x128xi32>
    %35 = arith.cmpi eq, %3, %34 : vector<8x128xi32>
    %36 = arith.extui %35 : vector<8x128xi1> to vector<8x128xi32>
    %37 = arith.addi %32, %36 : vector<8x128xi32>
    %38 = vector.extract_strided_slice %0 {offsets = [0, 7], sizes = [8, 1], strides = [1, 1]} : vector<8x32xi32> to vector<8x1xi32>
    %39 = vector.broadcast %38 : vector<8x1xi32> to vector<8x128xi32>
    %40 = arith.cmpi eq, %3, %39 : vector<8x128xi32>
    %41 = arith.extui %40 : vector<8x128xi1> to vector<8x128xi32>
    %42 = arith.addi %37, %41 : vector<8x128xi32>
    %43 = arith.sitofp %42 : vector<8x128xi32> to vector<8x128xf32>
    %44 = arith.truncf %43 : vector<8x128xf32> to vector<8x128xbf16>
    %cst = arith.constant dense<0.000000e+00> : vector<8x32xf32>
    %45 = tpu.matmul %44, %1, %cst {dimension_numbers = #tpu.dot_dimension_numbers<[1], [0], [0], [1], [0, 0, 1, 1], [], []>} : vector<8x128xbf16>, vector<128x32xbf16>, vector<8x32xf32> -> vector<8x32xf32>
    %cst_5 = arith.constant dense<0.000000e+00> : vector<8x32xf32>
    %46 = tpu.matmul %44, %2, %cst_5 {dimension_numbers = #tpu.dot_dimension_numbers<[1], [0], [0], [1], [0, 0, 1, 1], [], []>} : vector<8x128xbf16>, vector<128x32xbf16>, vector<8x32xf32> -> vector<8x32xf32>
    %47 = arith.addf %45, %46 : vector<8x32xf32>
    %c0_6 = arith.constant 0 : index
    %c0_7 = arith.constant 0 : index
    %48 = vector.load %arg4[%c0_6, %c0_7] : memref<8x128xf32, #tpu.memory_space<vmem>>, vector<8x32xf32>
    tpu.vector_store %arg4[%c0_6, %c0_7], %47 {strides = array<i32>} : memref<8x128xf32, #tpu.memory_space<vmem>>, vector<8x32xf32>,
    %49 = vector.extract_strided_slice %0 {offsets = [0, 8], sizes = [8, 1], strides = [1, 1]} : vector<8x32xi32> to vector<8x1xi32>
    %50 = vector.broadcast %49 : vector<8x1xi32> to vector<8x128xi32>
    %51 = arith.cmpi eq, %3, %50 : vector<8x128xi32>
    %52 = arith.extui %51 : vector<8x128xi1> to vector<8x128xi32>
    %53 = vector.extract_strided_slice %0 {offsets = [0, 9], sizes = [8, 1], strides = [1, 1]} : vector<8x32xi32> to vector<8x1xi32>
    %54 = vector.broadcast %53 : vector<8x1xi32> to vector<8x128xi32>
    %55 = arith.cmpi eq, %3, %54 : vector<8x128xi32>
    %56 = arith.extui %55 : vector<8x128xi1> to vector<8x128xi32>
    %57 = arith.addi %52, %56 : vector<8x128xi32>
    %58 = vector.extract_strided_slice %0 {offsets = [0, 10], sizes = [8, 1], strides = [1, 1]} : vector<8x32xi32> to vector<8x1xi32>
    %59 = vector.broadcast %58 : vector<8x1xi32> to vector<8x128xi32>
    %60 = arith.cmpi eq, %3, %59 : vector<8x128xi32>
    %61 = arith.extui %60 : vector<8x128xi1> to vector<8x128xi32>
    %62 = arith.addi %57, %61 : vector<8x128xi32>
    %63 = vector.extract_strided_slice %0 {offsets = [0, 11], sizes = [8, 1], strides = [1, 1]} : vector<8x32xi32> to vector<8x1xi32>
    %64 = vector.broadcast %63 : vector<8x1xi32> to vector<8x128xi32>
    %65 = arith.cmpi eq, %3, %64 : vector<8x128xi32>
    %66 = arith.extui %65 : vector<8x128xi1> to vector<8x128xi32>
    %67 = arith.addi %62, %66 : vector<8x128xi32>
    %68 = vector.extract_strided_slice %0 {offsets = [0, 12], sizes = [8, 1], strides = [1, 1]} : vector<8x32xi32> to vector<8x1xi32>
    %69 = vector.broadcast %68 : vector<8x1xi32> to vector<8x128xi32>
    %70 = arith.cmpi eq, %3, %69 : vector<8x128xi32>
    %71 = arith.extui %70 : vector<8x128xi1> to vector<8x128xi32>
    %72 = arith.addi %67, %71 : vector<8x128xi32>
    %73 = vector.extract_strided_slice %0 {offsets = [0, 13], sizes = [8, 1], strides = [1, 1]} : vector<8x32xi32> to vector<8x1xi32>
    %74 = vector.broadcast %73 : vector<8x1xi32> to vector<8x128xi32>
    %75 = arith.cmpi eq, %3, %74 : vector<8x128xi32>
    %76 = arith.extui %75 : vector<8x128xi1> to vector<8x128xi32>
    %77 = arith.addi %72, %76 : vector<8x128xi32>
    %78 = vector.extract_strided_slice %0 {offsets = [0, 14], sizes = [8, 1], strides = [1, 1]} : vector<8x32xi32> to vector<8x1xi32>
    %79 = vector.broadcast %78 : vector<8x1xi32> to vector<8x128xi32>
    %80 = arith.cmpi eq, %3, %79 : vector<8x128xi32>
    %81 = arith.extui %80 : vector<8x128xi1> to vector<8x128xi32>
    %82 = arith.addi %77, %81 : vector<8x128xi32>
    %83 = vector.extract_strided_slice %0 {offsets = [0, 15], sizes = [8, 1], strides = [1, 1]} : vector<8x32xi32> to vector<8x1xi32>
    %84 = vector.broadcast %83 : vector<8x1xi32> to vector<8x128xi32>
    %85 = arith.cmpi eq, %3, %84 : vector<8x128xi32>
    %86 = arith.extui %85 : vector<8x128xi1> to vector<8x128xi32>
    %87 = arith.addi %82, %86 : vector<8x128xi32>
    %88 = arith.sitofp %87 : vector<8x128xi32> to vector<8x128xf32>
    %89 = arith.truncf %88 : vector<8x128xf32> to vector<8x128xbf16>
    %cst_8 = arith.constant dense<0.000000e+00> : vector<8x32xf32>
    %90 = tpu.matmul %89, %1, %cst_8 {dimension_numbers = #tpu.dot_dimension_numbers<[1], [0], [0], [1], [0, 0, 1, 1], [], []>} : vector<8x128xbf16>, vector<128x32xbf16>, vector<8x32xf32> -> vector<8x32xf32>
    %cst_9 = arith.constant dense<0.000000e+00> : vector<8x32xf32>
    %91 = tpu.matmul %89, %2, %cst_9 {dimension_numbers = #tpu.dot_dimension_numbers<[1], [0], [0], [1], [0, 0, 1, 1], [], []>} : vector<8x128xbf16>, vector<128x32xbf16>, vector<8x32xf32> -> vector<8x32xf32>
    %92 = arith.addf %90, %91 : vector<8x32xf32>
    %c0_10 = arith.constant 0 : index
    %c32 = arith.constant 32 : index
    %93 = vector.load %arg4[%c0_10, %c32] : memref<8x128xf32, #tpu.memory_space<vmem>>, vector<8x32xf32>
    tpu.vector_store %arg4[%c0_10, %c32], %92 {strides = array<i32>} : memref<8x128xf32, #tpu.memory_space<vmem>>, vector<8x32xf32>,
    %94 = vector.extract_strided_slice %0 {offsets = [0, 16], sizes = [8, 1], strides = [1, 1]} : vector<8x32xi32> to vector<8x1xi32>
    %95 = vector.broadcast %94 : vector<8x1xi32> to vector<8x128xi32>
    %96 = arith.cmpi eq, %3, %95 : vector<8x128xi32>
    %97 = arith.extui %96 : vector<8x128xi1> to vector<8x128xi32>
    %98 = vector.extract_strided_slice %0 {offsets = [0, 17], sizes = [8, 1], strides = [1, 1]} : vector<8x32xi32> to vector<8x1xi32>
    %99 = vector.broadcast %98 : vector<8x1xi32> to vector<8x128xi32>
    %100 = arith.cmpi eq, %3, %99 : vector<8x128xi32>
    %101 = arith.extui %100 : vector<8x128xi1> to vector<8x128xi32>
    %102 = arith.addi %97, %101 : vector<8x128xi32>
    %103 = vector.extract_strided_slice %0 {offsets = [0, 18], sizes = [8, 1], strides = [1, 1]} : vector<8x32xi32> to vector<8x1xi32>
    %104 = vector.broadcast %103 : vector<8x1xi32> to vector<8x128xi32>
    %105 = arith.cmpi eq, %3, %104 : vector<8x128xi32>
    %106 = arith.extui %105 : vector<8x128xi1> to vector<8x128xi32>
    %107 = arith.addi %102, %106 : vector<8x128xi32>
    %108 = vector.extract_strided_slice %0 {offsets = [0, 19], sizes = [8, 1], strides = [1, 1]} : vector<8x32xi32> to vector<8x1xi32>
    %109 = vector.broadcast %108 : vector<8x1xi32> to vector<8x128xi32>
    %110 = arith.cmpi eq, %3, %109 : vector<8x128xi32>
    %111 = arith.extui %110 : vector<8x128xi1> to vector<8x128xi32>
    %112 = arith.addi %107, %111 : vector<8x128xi32>
    %113 = vector.extract_strided_slice %0 {offsets = [0, 20], sizes = [8, 1], strides = [1, 1]} : vector<8x32xi32> to vector<8x1xi32>
    %114 = vector.broadcast %113 : vector<8x1xi32> to vector<8x128xi32>
    %115 = arith.cmpi eq, %3, %114 : vector<8x128xi32>
    %116 = arith.extui %115 : vector<8x128xi1> to vector<8x128xi32>
    %117 = arith.addi %112, %116 : vector<8x128xi32>
    %118 = vector.extract_strided_slice %0 {offsets = [0, 21], sizes = [8, 1], strides = [1, 1]} : vector<8x32xi32> to vector<8x1xi32>
    %119 = vector.broadcast %118 : vector<8x1xi32> to vector<8x128xi32>
    %120 = arith.cmpi eq, %3, %119 : vector<8x128xi32>
    %121 = arith.extui %120 : vector<8x128xi1> to vector<8x128xi32>
    %122 = arith.addi %117, %121 : vector<8x128xi32>
    %123 = vector.extract_strided_slice %0 {offsets = [0, 22], sizes = [8, 1], strides = [1, 1]} : vector<8x32xi32> to vector<8x1xi32>
    %124 = vector.broadcast %123 : vector<8x1xi32> to vector<8x128xi32>
    %125 = arith.cmpi eq, %3, %124 : vector<8x128xi32>
    %126 = arith.extui %125 : vector<8x128xi1> to vector<8x128xi32>
    %127 = arith.addi %122, %126 : vector<8x128xi32>
    %128 = vector.extract_strided_slice %0 {offsets = [0, 23], sizes = [8, 1], strides = [1, 1]} : vector<8x32xi32> to vector<8x1xi32>
    %129 = vector.broadcast %128 : vector<8x1xi32> to vector<8x128xi32>
    %130 = arith.cmpi eq, %3, %129 : vector<8x128xi32>
    %131 = arith.extui %130 : vector<8x128xi1> to vector<8x128xi32>
    %132 = arith.addi %127, %131 : vector<8x128xi32>
    %133 = arith.sitofp %132 : vector<8x128xi32> to vector<8x128xf32>
    %134 = arith.truncf %133 : vector<8x128xf32> to vector<8x128xbf16>
    %cst_11 = arith.constant dense<0.000000e+00> : vector<8x32xf32>
    %135 = tpu.matmul %134, %1, %cst_11 {dimension_numbers = #tpu.dot_dimension_numbers<[1], [0], [0], [1], [0, 0, 1, 1], [], []>} : vector<8x128xbf16>, vector<128x32xbf16>, vector<8x32xf32> -> vector<8x32xf32>
    %cst_12 = arith.constant dense<0.000000e+00> : vector<8x32xf32>
    %136 = tpu.matmul %134, %2, %cst_12 {dimension_numbers = #tpu.dot_dimension_numbers<[1], [0], [0], [1], [0, 0, 1, 1], [], []>} : vector<8x128xbf16>, vector<128x32xbf16>, vector<8x32xf32> -> vector<8x32xf32>
    %137 = arith.addf %135, %136 : vector<8x32xf32>
    %c0_13 = arith.constant 0 : index
    %c64 = arith.constant 64 : index
    %138 = vector.load %arg4[%c0_13, %c64] : memref<8x128xf32, #tpu.memory_space<vmem>>, vector<8x32xf32>
    tpu.vector_store %arg4[%c0_13, %c64], %137 {strides = array<i32>} : memref<8x128xf32, #tpu.memory_space<vmem>>, vector<8x32xf32>,
    %139 = vector.extract_strided_slice %0 {offsets = [0, 24], sizes = [8, 1], strides = [1, 1]} : vector<8x32xi32> to vector<8x1xi32>
    %140 = vector.broadcast %139 : vector<8x1xi32> to vector<8x128xi32>
    %141 = arith.cmpi eq, %3, %140 : vector<8x128xi32>
    %142 = arith.extui %141 : vector<8x128xi1> to vector<8x128xi32>
    %143 = vector.extract_strided_slice %0 {offsets = [0, 25], sizes = [8, 1], strides = [1, 1]} : vector<8x32xi32> to vector<8x1xi32>
    %144 = vector.broadcast %143 : vector<8x1xi32> to vector<8x128xi32>
    %145 = arith.cmpi eq, %3, %144 : vector<8x128xi32>
    %146 = arith.extui %145 : vector<8x128xi1> to vector<8x128xi32>
    %147 = arith.addi %142, %146 : vector<8x128xi32>
    %148 = vector.extract_strided_slice %0 {offsets = [0, 26], sizes = [8, 1], strides = [1, 1]} : vector<8x32xi32> to vector<8x1xi32>
    %149 = vector.broadcast %148 : vector<8x1xi32> to vector<8x128xi32>
    %150 = arith.cmpi eq, %3, %149 : vector<8x128xi32>
    %151 = arith.extui %150 : vector<8x128xi1> to vector<8x128xi32>
    %152 = arith.addi %147, %151 : vector<8x128xi32>
    %153 = vector.extract_strided_slice %0 {offsets = [0, 27], sizes = [8, 1], strides = [1, 1]} : vector<8x32xi32> to vector<8x1xi32>
    %154 = vector.broadcast %153 : vector<8x1xi32> to vector<8x128xi32>
    %155 = arith.cmpi eq, %3, %154 : vector<8x128xi32>
    %156 = arith.extui %155 : vector<8x128xi1> to vector<8x128xi32>
    %157 = arith.addi %152, %156 : vector<8x128xi32>
    %158 = vector.extract_strided_slice %0 {offsets = [0, 28], sizes = [8, 1], strides = [1, 1]} : vector<8x32xi32> to vector<8x1xi32>
    %159 = vector.broadcast %158 : vector<8x1xi32> to vector<8x128xi32>
    %160 = arith.cmpi eq, %3, %159 : vector<8x128xi32>
    %161 = arith.extui %160 : vector<8x128xi1> to vector<8x128xi32>
    %162 = arith.addi %157, %161 : vector<8x128xi32>
    %163 = vector.extract_strided_slice %0 {offsets = [0, 29], sizes = [8, 1], strides = [1, 1]} : vector<8x32xi32> to vector<8x1xi32>
    %164 = vector.broadcast %163 : vector<8x1xi32> to vector<8x128xi32>
    %165 = arith.cmpi eq, %3, %164 : vector<8x128xi32>
    %166 = arith.extui %165 : vector<8x128xi1> to vector<8x128xi32>
    %167 = arith.addi %162, %166 : vector<8x128xi32>
    %168 = vector.extract_strided_slice %0 {offsets = [0, 30], sizes = [8, 1], strides = [1, 1]} : vector<8x32xi32> to vector<8x1xi32>
    %169 = vector.broadcast %168 : vector<8x1xi32> to vector<8x128xi32>
    %170 = arith.cmpi eq, %3, %169 : vector<8x128xi32>
    %171 = arith.extui %170 : vector<8x128xi1> to vector<8x128xi32>
    %172 = arith.addi %167, %171 : vector<8x128xi32>
    %173 = vector.extract_strided_slice %0 {offsets = [0, 31], sizes = [8, 1], strides = [1, 1]} : vector<8x32xi32> to vector<8x1xi32>
    %174 = vector.broadcast %173 : vector<8x1xi32> to vector<8x128xi32>
    %175 = arith.cmpi eq, %3, %174 : vector<8x128xi32>
    %176 = arith.extui %175 : vector<8x128xi1> to vector<8x128xi32>
    %177 = arith.addi %172, %176 : vector<8x128xi32>
    %178 = arith.sitofp %177 : vector<8x128xi32> to vector<8x128xf32>
    %179 = arith.truncf %178 : vector<8x128xf32> to vector<8x128xbf16>
    %cst_14 = arith.constant dense<0.000000e+00> : vector<8x32xf32>
    %180 = tpu.matmul %179, %1, %cst_14 {dimension_numbers = #tpu.dot_dimension_numbers<[1], [0], [0], [1], [0, 0, 1, 1], [], []>} : vector<8x128xbf16>, vector<128x32xbf16>, vector<8x32xf32> -> vector<8x32xf32>
    %cst_15 = arith.constant dense<0.000000e+00> : vector<8x32xf32>
    %181 = tpu.matmul %179, %2, %cst_15 {dimension_numbers = #tpu.dot_dimension_numbers<[1], [0], [0], [1], [0, 0, 1, 1], [], []>} : vector<8x128xbf16>, vector<128x32xbf16>, vector<8x32xf32> -> vector<8x32xf32>
    %182 = arith.addf %180, %181 : vector<8x32xf32>
    %c0_16 = arith.constant 0 : index
    %c96 = arith.constant 96 : index
    %183 = vector.load %arg4[%c0_16, %c96] : memref<8x128xf32, #tpu.memory_space<vmem>>, vector<8x32xf32>
    tpu.vector_store %arg4[%c0_16, %c96], %182 {strides = array<i32>} : memref<8x128xf32, #tpu.memory_space<vmem>>, vector<8x32xf32>,
    return
  }
  func.func @transform_0(%arg0: i32) -> (i32, i32) {
    %c0_i32 = arith.constant 0 : i32
    %c0_i32_0 = arith.constant 0 : i32
    return %arg0, %c0_i32 : i32, i32
  }
  func.func @transform_1(%arg0: i32) -> (i32, i32) {
    %c0_i32 = arith.constant 0 : i32
    %c0_i32_0 = arith.constant 0 : i32
    %c0_i32_1 = arith.constant 0 : i32
    return %c0_i32, %c0_i32_0 : i32, i32
  }
  func.func @transform_2(%arg0: i32) -> (i32, i32) {
    %c0_i32 = arith.constant 0 : i32
    %c0_i32_0 = arith.constant 0 : i32
    %c0_i32_1 = arith.constant 0 : i32
    return %c0_i32, %c0_i32_0 : i32, i32
  }
  func.func @transform_3(%arg0: i32) -> (i32, i32) {
    %c0_i32 = arith.constant 0 : i32
    %c0_i32_0 = arith.constant 0 : i32
    return %arg0, %c0_i32 : i32, i32
  }
}

</mosaic_0001>

<bundles_post_ra>
// kernel: tpu_custom_call.1
= control target key start
LH: loop header
LB: loop body
LE: loop exit
PB: predicated region body
PF: predicated region fallthrough
CT: control target
= control target key end

     0   :  { %v656_v1 = vmov 10   ;;  %v657_v2 = vmov 8   ;;  %s972_s0 = inlined_call_operand.vmem [shape: s32[8,32], index: 0, kind: input, shape index: {}]   ;;  %s973_s1 = inlined_call_operand.vmem [shape: bf16[128,32], index: 1, kind: input, shape index: {}]   ;;  %s974_s2 = inlined_call_operand.vmem [shape: bf16[128,32], index: 2, kind: input, shape index: {}]   ;;  %s975_s3 = inlined_call_operand.hbm [shape: f32[8,128], index: 3, kind: output, shape index: {}]  }
   0x1   :  { %v715_v0 = vld [vmem:[%s972_s0] sm:$0xff]  ;;  %600 = vset.pattern.permute.xlu1 %v656_v1  ;;  %598 = vset.pattern.permute.xlu0 %v657_v2 }
   0x2   :  { %8 = vsyncpa [#allocation3], 0  ;;  %235 = vperm.xlu1 %600, %v715_v0   ;;  %224 = vperm.xlu0 %598, %v715_v0   ;;  %v658_v3 = vmov 0   ;;  %v659_v4 = vmov 11   ;;  %v660_v5 = vmov 9   ;;  %v661_v6 = vmov 1  }
   0x3   :  { %602 = vset.pattern.permute.xlu2 %v658_v3  ;;  %v662_v7 = vmov 12   ;;  %v663_v8 = vmov 13   ;;  %v664_v9 = vmov 2   ;;  %v665_v10 = vmov 3   ;;  %v747_v28 = vld [vmem:[%s974_s2 + $0x38] sm:$0xff]  ;;  %v760_v30 = vld [vmem:[%s974_s2 + $0x30] sm:$0xff] }
   0x4   :  { %51 = vperm.xlu2 %602, %v715_v0   ;;  %v666_v11 = vmov 5   ;;  %v667_v12 = vmov 14   ;;  %v668_v13 = vmov 4   ;;  %v669_v14 = vmov 26   ;;  %v752_v29 = vld [vmem:[%s973_s1 + $0x38] sm:$0xff]  ;;  %272 = vmatpush.bf16.msra.mxu2 %v747_v28  ;;  %v765_v31 = vld [vmem:[%s973_s1 + $0x30] sm:$0xff] }
   0x5   :  { %v670_v15 = vmov 15   ;;  %v671_v16 = vmov 6   ;;  %v672_v17 = vmov 18   ;;  %v673_v18 = vmov 24   ;;  %285 = vmatpush.bf16.msra.mxu3 %v752_v29  ;;  %147 = vmatpush.bf16.msra.mxu0 %v747_v28  ;;  %v776_v33 = vld [vmem:[%s974_s2 + $0x28] sm:$0xff]  ;;  %v793_v37 = vld [vmem:[%s974_s2 + $0x20] sm:$0xff] }
   0x6   :  { %v674_v19 = vmov 25   ;;  %v675_v20 = vmov 7   ;;  %v676_v21 = vmov 31   ;;  %v677_v22 = vmov 27   ;;  %208 = vmatpush.bf16.msra.mxu1 %v752_v29  ;;  %v781_v34 = vld [vmem:[%s973_s1 + $0x28] sm:$0xff]  ;;  %v798_v38 = vld [vmem:[%s973_s1 + $0x20] sm:$0xff] }
   0x7   :  { %v678_v23 = vmov 16   ;;  %v679_v24 = vmov 17   ;;  %v680_v25 = vmov 28   ;;  %v681_v26 = vmov 29   ;;  %v805_v39 = vld [vmem:[%s974_s2 + $0x18] sm:$0xff]  ;;  %v824_v44 = vld [vmem:[%s974_s2 + $0x10] sm:$0xff] }
   0x8   :  { %v682_v27 = vmov 19   ;;  %273 = vmatpush.bf16.msra.mxu2 %v760_v30  ;;  %v683_v32 = vmov 30   ;;  %v684_v35 = vmov 20   ;;  %v811_v40 = vld [vmem:[%s973_s1 + $0x18] sm:$0xff]  ;;  %v685_v41 = vmov 21   ;;  %v829_v45 = vld [vmem:[%s973_s1 + $0x10] sm:$0xff] }
   0x9   :  { %286 = vmatpush.bf16.msra.mxu3 %v765_v31  ;;  %148 = vmatpush.bf16.msra.mxu0 %v760_v30  ;;  %v686_v42 = vmov 22   ;;  %v838_v46 = vld [vmem:[%s974_s2 + $0x8] sm:$0xff]  ;;  %v687_v48 = vmov 23   ;;  %v853_v49 = vld [vmem:[%s974_s2] sm:$0xff]  ;;  %v48_v52 = vlaneseq  ;;  %s689_s2 = smov 96   ;;  %s690_s17 = smov 64  }
   0xa   :  { %601 = vset.pattern.permute.xlu1 %v659_v4  ;;  %599 = vset.pattern.permute.xlu0 %v660_v5  ;;  %v843_v47 = vld [vmem:[%s973_s1 + $0x8] sm:$0xff]  ;;  %v858_v50 = vld [vmem:[%s973_s1] sm:$0xff]  ;;  %s688_s1 = smov 32   ;;  %s691_s18 = smov [#allocation2]  }
   0xb   :  { %241 = vperm.xlu1 %601, %v715_v0   ;;  %229 = vperm.xlu0 %599, %v715_v0   ;;  %v873_v55 = vand.u32 127, %v48_v52  ;;  %s471_s19 = sshll.u32 %s691_s18, 4  ;;  %s473_s22 = sshll.u32 %s975_s3, 4  ;;  %s472_s19 = int_to_ptr.vmem [resolvable:$true] %s471_s19  ;;  %s474_s22 = int_to_ptr.hbm [resolvable:$true] %s473_s22 }
   0xc   :  { %603 = vset.pattern.permute.xlu2 %v661_v6  ;;  %209 = vmatpush.bf16.msra.mxu1 %v765_v31 }
   0xd   :  { %56 = vperm.xlu2 %603, %v715_v0   ;;  %274 = vmatpush.bf16.msra.mxu2 %v776_v33 }
   0xe   :  { %287 = vmatpush.bf16.msra.mxu3 %v781_v34  ;;  %149 = vmatpush.bf16.msra.mxu0 %v776_v33 }
  0x10   :  { %210 = vmatpush.bf16.msra.mxu1 %v781_v34 }
  0x11   :  { %275 = vmatpush.bf16.msra.mxu2 %v793_v37 }
  0x12   :  { %288 = vmatpush.bf16.msra.mxu3 %v798_v38  ;;  %150 = vmatpush.bf16.msra.mxu0 %v793_v37 }
  0x13   :  { %604 = vset.pattern.permute.xlu1 %v662_v7  ;;  %606 = vset.pattern.permute.xlu0 %v663_v8 }
  0x14   :  { %247 = vperm.xlu1 %604, %v715_v0   ;;  %253 = vperm.xlu0 %606, %v715_v0  }
  0x15   :  { %605 = vset.pattern.permute.xlu2 %v664_v9  ;;  %211 = vmatpush.bf16.msra.mxu1 %v798_v38 }
  0x16   :  { %62 = vperm.xlu2 %605, %v715_v0   ;;  %276 = vmatpush.bf16.msra.mxu2 %v805_v39 }
  0x17   :  { %289 = vmatpush.bf16.msra.mxu3 %v811_v40  ;;  %151 = vmatpush.bf16.msra.mxu0 %v805_v39 }
  0x19   :  { %212 = vmatpush.bf16.msra.mxu1 %v811_v40 }
  0x1a   :  { %277 = vmatpush.bf16.msra.mxu2 %v824_v44 }
  0x1b   :  { %290 = vmatpush.bf16.msra.mxu3 %v829_v45  ;;  %152 = vmatpush.bf16.msra.mxu0 %v824_v44 }
  0x1c   :  { %607 = vset.pattern.permute.xlu1 %v665_v10  ;;  %611 = vset.pattern.permute.xlu0 %v666_v11 }
  0x1d   :  { %68 = vperm.xlu1 %607, %v715_v0   ;;  %80 = vperm.xlu0 %611, %v715_v0  }
  0x1e   :  { %608 = vset.pattern.permute.xlu2 %v667_v12  ;;  %213 = vmatpush.bf16.msra.mxu1 %v829_v45 }
  0x1f   :  { %259 = vperm.xlu2 %608, %v715_v0   ;;  %278 = vmatpush.bf16.msra.mxu2 %v838_v46 }
  0x20   :  { %291 = vmatpush.bf16.msra.mxu3 %v843_v47  ;;  %153 = vmatpush.bf16.msra.mxu0 %v838_v46 }
  0x22   :  { %214 = vmatpush.bf16.msra.mxu1 %v843_v47 }
  0x23   :  { %279 = vmatpush.bf16.msra.mxu2 %v853_v49 }
  0x24   :  { %292 = vmatpush.bf16.msra.mxu3 %v858_v50  ;;  %154 = vmatpush.bf16.msra.mxu0 %v853_v49 }
  0x25   :  { %609 = vset.pattern.permute.xlu1 %v668_v13  ;;  %616 = vset.pattern.permute.xlu0 %v669_v14 }
  0x26   :  { %74 = vperm.xlu1 %609, %v715_v0   ;;  %397 = vperm.xlu0 %616, %v715_v0  }
  0x27   :  { %610 = vset.pattern.permute.xlu2 %v670_v15  ;;  %434 = vmatpush.bf16.msrb.mxu2 %v747_v28 }
  0x28   :  { %265 = vperm.xlu2 %610, %v715_v0   ;;  %215 = vmatpush.bf16.msra.mxu1 %v858_v50 }
  0x29   :  { %447 = vmatpush.bf16.msrb.mxu3 %v752_v29  ;;  %353 = vmatpush.bf16.msrb.mxu0 %v747_v28 }
  0x2b   :  { %435 = vmatpush.bf16.msrb.mxu2 %v760_v30 }
  0x2c   :  { %366 = vmatpush.bf16.msrb.mxu1 %v752_v29 }
  0x2d   :  { %448 = vmatpush.bf16.msrb.mxu3 %v765_v31  ;;  %354 = vmatpush.bf16.msrb.mxu0 %v760_v30 }
  0x2e   :  { %612 = vset.pattern.permute.xlu1 %v671_v16  ;;  %621 = vset.pattern.permute.xlu0 %v672_v17 }
  0x2f   :  { %86 = vperm.xlu1 %612, %v715_v0   ;;  %316 = vperm.xlu0 %621, %v715_v0  }
  0x30   :  { %613 = vset.pattern.permute.xlu2 %v673_v18  ;;  %367 = vmatpush.bf16.msrb.mxu1 %v765_v31 }
  0x31   :  { %386 = vperm.xlu2 %613, %v715_v0   ;;  %436 = vmatpush.bf16.msrb.mxu2 %v776_v33 }
  0x32   :  { %449 = vmatpush.bf16.msrb.mxu3 %v781_v34  ;;  %355 = vmatpush.bf16.msrb.mxu0 %v776_v33 }
  0x34   :  { %368 = vmatpush.bf16.msrb.mxu1 %v781_v34 }
  0x35   :  { %437 = vmatpush.bf16.msrb.mxu2 %v793_v37 }
  0x36   :  { %450 = vmatpush.bf16.msrb.mxu3 %v798_v38  ;;  %356 = vmatpush.bf16.msrb.mxu0 %v793_v37 }
  0x37   :  { %614 = vset.pattern.permute.xlu1 %v674_v19  ;;  %626 = vset.pattern.permute.xlu0 %v676_v21 }
  0x38   :  { %391 = vperm.xlu1 %614, %v715_v0   ;;  %427 = vperm.xlu0 %626, %v715_v0  }
  0x39   :  { %615 = vset.pattern.permute.xlu2 %v675_v20  ;;  %369 = vmatpush.bf16.msrb.mxu1 %v798_v38 }
  0x3a   :  { %92 = vperm.xlu2 %615, %v715_v0   ;;  %438 = vmatpush.bf16.msrb.mxu2 %v805_v39 }
  0x3b   :  { %451 = vmatpush.bf16.msrb.mxu3 %v811_v40  ;;  %357 = vmatpush.bf16.msrb.mxu0 %v805_v39 }
  0x3d   :  { %370 = vmatpush.bf16.msrb.mxu1 %v811_v40 }
  0x3e   :  { %439 = vmatpush.bf16.msrb.mxu2 %v824_v44 }
  0x3f   :  { %452 = vmatpush.bf16.msrb.mxu3 %v829_v45  ;;  %358 = vmatpush.bf16.msrb.mxu0 %v824_v44 }
  0x40   :  { %617 = vset.pattern.permute.xlu1 %v677_v22 }
  0x41   :  { %403 = vperm.xlu1 %617, %v715_v0   ;;  %371 = vmatpush.bf16.msrb.mxu1 %v829_v45 }
  0x42   :  { %618 = vset.pattern.permute.xlu2 %v678_v23  ;;  %440 = vmatpush.bf16.msrb.mxu2 %v838_v46 }
  0x43   :  { %305 = vperm.xlu2 %618, %v715_v0   ;;  %453 = vmatpush.bf16.msrb.mxu3 %v843_v47 }
  0x44   :  { %359 = vmatpush.bf16.msrb.mxu0 %v838_v46 }
  0x45   :  { %372 = vmatpush.bf16.msrb.mxu1 %v843_v47 }
  0x46   :  { %441 = vmatpush.bf16.msrb.mxu2 %v853_v49 }
  0x47   :  { %454 = vmatpush.bf16.msrb.mxu3 %v858_v50 }
  0x48   :  { %360 = vmatpush.bf16.msrb.mxu0 %v853_v49 }
  0x49   :  { %619 = vset.pattern.permute.xlu1 %v679_v24  ;;  %373 = vmatpush.bf16.msrb.mxu1 %v858_v50 }
  0x4a   :  { %310 = vperm.xlu1 %619, %v715_v0  }
  0x4b   :  { %620 = vset.pattern.permute.xlu2 %v680_v25 }
  0x4c   :  { %409 = vperm.xlu2 %620, %v715_v0  }
  0x52   :  { %622 = vset.pattern.permute.xlu1 %v681_v26 }
  0x53   :  { %415 = vperm.xlu1 %622, %v715_v0  }
  0x54   :  { %623 = vset.pattern.permute.xlu2 %v682_v27 }
  0x55   :  { %322 = vperm.xlu2 %623, %v715_v0  }
  0x5b   :  { %624 = vset.pattern.permute.xlu1 %v683_v32 }
  0x5c   :  { %421 = vperm.xlu1 %624, %v715_v0  }
  0x5d   :  { %625 = vset.pattern.permute.xlu2 %v684_v35 }
  0x5e   :  { %328 = vperm.xlu2 %625, %v715_v0   ;;  %v785_v36 = vpop.permute.xlu2 %51 }
  0x5f   :  { %vm53_vm8 = vcmp.eq.s32.totalorder %v873_v55, %v785_v36 }
  0x60   :  { %v54_v16 = vsel %vm53_vm8, 1, %v658_v3 }
  0x64   :  { %627 = vset.pattern.permute.xlu1 %v685_v41 }
  0x65   :  { %334 = vperm.xlu1 %627, %v715_v0  }
  0x66   :  { %628 = vset.pattern.permute.xlu2 %v686_v42 }
  0x67   :  { %v817_v43 = vpop.permute.xlu2 %56  ;;  %340 = vperm.xlu2 %628, %v715_v0  }
  0x68   :  { %vm58_vm9 = vcmp.eq.s32.totalorder %v873_v55, %v817_v43 }
  0x69   :  { %v59_v17 = vsel %vm58_vm9, 1, %v658_v3 }
  0x6a   :  { %v60_v20 = vadd.s32 %v59_v17, %v54_v16 }
  0x6d   :  { %629 = vset.pattern.permute.xlu1 %v687_v48 }
  0x6e   :  { %346 = vperm.xlu1 %629, %v715_v0  }
  0x70   :  { %v862_v51 = vpop.permute.xlu2 %62 }
  0x71   :  { %vm64_vm10 = vcmp.eq.s32.totalorder %v873_v55, %v862_v51 }
  0x72   :  { %v65_v21 = vsel %vm64_vm10, 1, %v658_v3 }
  0x73   :  { %v66_v25 = vadd.s32 %v65_v21, %v60_v20 }
  0x74   :  { %v236_v53 = vpop.permute.xlu1 %235  ;;  %v225_v54 = vpop.permute.xlu0 %224 }
  0x75   :  { %vm226_vm0 = vcmp.eq.s32.totalorder %v873_v55, %v225_v54  ;;  %vm237_vm2 = vcmp.eq.s32.totalorder %v873_v55, %v236_v53 }
  0x76   :  { %v227_v57 = vsel %vm226_vm0, 1, %v658_v3  ;;  %v238_v62 = vsel %vm237_vm2, 1, %v658_v3 }
  0x79   :  { %v260_v56 = vpop.permute.xlu2 %259 }
  0x7a   :  { %vm261_vm4 = vcmp.eq.s32.totalorder %v873_v55, %v260_v56 }
  0x7b   :  { %v262_v9 = vsel %vm261_vm4, 1, %v658_v3 }
  0x7d   :  { %v242_v58 = vpop.permute.xlu1 %241  ;;  %v230_v59 = vpop.permute.xlu0 %229 }
  0x7e   :  { %vm231_vm1 = vcmp.eq.s32.totalorder %v873_v55, %v230_v59  ;;  %vm243_vm3 = vcmp.eq.s32.totalorder %v873_v55, %v242_v58 }
  0x7f   :  { %v232_v60 = vsel %vm231_vm1, 1, %v658_v3  ;;  %v244_v1 = vsel %vm243_vm3, 1, %v658_v3 }
  0x80   :  { %v233_v61 = vadd.s32 %v232_v60, %v227_v57 }
  0x82   :  { %v239_v63 = vadd.s32 %v238_v62, %v233_v61  ;;  %v266_v0 = vpop.permute.xlu2 %265 }
  0x83   :  { %vm267_vm7 = vcmp.eq.s32.totalorder %v873_v55, %v266_v0 }
  0x84   :  { %v245_v5 = vadd.s32 %v244_v1, %v239_v63  ;;  %v268_v11 = vsel %vm267_vm7, 1, %v658_v3 }
  0x86   :  { %v248_v2 = vpop.permute.xlu1 %247  ;;  %v254_v4 = vpop.permute.xlu0 %253 }
  0x87   :  { %vm249_vm5 = vcmp.eq.s32.totalorder %v873_v55, %v248_v2  ;;  %vm255_vm6 = vcmp.eq.s32.totalorder %v873_v55, %v254_v4 }
  0x88   :  { %v250_v6 = vsel %vm249_vm5, 1, %v658_v3  ;;  %v256_v7 = vsel %vm255_vm6, 1, %v658_v3 }
  0x89   :  { %v251_v8 = vadd.s32 %v250_v6, %v245_v5 }
  0x8b   :  { %v257_v10 = vadd.s32 %v256_v7, %v251_v8  ;;  %v387_v19 = vpop.permute.xlu2 %386 }
  0x8c   :  { %vm388_vm1 = vcmp.eq.s32.totalorder %v873_v55, %v387_v19 }
  0x8d   :  { %v263_v12 = vadd.s32 %v262_v9, %v257_v10  ;;  %v389_v46 = vsel %vm388_vm1, 1, %v658_v3  ;;  %vm302_vm1 = vcmask 523520  }
  0x8f   :  { %v69_v13 = vpop.permute.xlu1 %68  ;;  %v269_v14 = vadd.s32 %v268_v11, %v263_v12  ;;  %v81_v24 = vpop.permute.xlu0 %80 }
  0x90   :  { %vm70_vm11 = vcmp.eq.s32.totalorder %v873_v55, %v69_v13  ;;  %vm82_vm13 = vcmp.eq.s32.totalorder %v873_v55, %v81_v24 }
  0x91   :  { %v270_v15 = vcvt.s32.f32 %v269_v14  ;;  %v71_v23 = vsel %vm70_vm11, 1, %v658_v3  ;;  %v83_v30 = vsel %vm82_vm13, 1, %v658_v3 }
  0x92   :  { %v72_v27 = vadd.s32 %v71_v23, %v66_v25 }
  0x93   :  { %v271_v18 = vpack.c.bf16 %v270_v15, %v270_v15 }
  0x94   :  { %v93_v28 = vpop.permute.xlu2 %92 }
  0x95   :  { %280 = vmatmul.bf16.vlgmr.msra.gmra.mxu2 %v271_v18  ;;  %293 = vmatmul.bf16.vlgmr.msra.gmra.mxu3 %v271_v18  ;;  %vm94_vm14 = vcmp.eq.s32.totalorder %v873_v55, %v93_v28 }
  0x96   :  { %v95_v34 = vsel %vm94_vm14, 1, %v658_v3 }
  0x98   :  { %v75_v22 = vpop.permute.xlu1 %74  ;;  %v398_v42 = vpop.permute.xlu0 %397 }
  0x99   :  { %vm76_vm12 = vcmp.eq.s32.totalorder %v873_v55, %v75_v22  ;;  %vm399_vm2 = vcmp.eq.s32.totalorder %v873_v55, %v398_v42 }
  0x9a   :  { %v77_v26 = vsel %vm76_vm12, 1, %v658_v3  ;;  %v400_v49 = vsel %vm399_vm2, 1, %v658_v3  ;;  %vm383_vm2 = vcmask 785920  }
  0x9b   :  { %v78_v29 = vadd.s32 %v77_v26, %v72_v27 }
  0x9d   :  { %v84_v32 = vadd.s32 %v83_v30, %v78_v29  ;;  %v306_v40 = vpop.permute.xlu2 %305 }
  0x9e   :  { %vm307_vm7 = vcmp.eq.s32.totalorder %v873_v55, %v306_v40 }
  0x9f   :  { %v308_v61 = vsel %vm307_vm7, 1, %v658_v3 }
  0xa1   :  { %v87_v31 = vpop.permute.xlu1 %86  ;;  %v317_v47 = vpop.permute.xlu0 %316 }
  0xa2   :  { %vm88_vm15 = vcmp.eq.s32.totalorder %v873_v55, %v87_v31  ;;  %vm318_vm8 = vcmp.eq.s32.totalorder %v873_v55, %v317_v47 }
  0xa3   :  { %v89_v33 = vsel %vm88_vm15, 1, %v658_v3  ;;  %v319_v1 = vsel %vm318_vm8, 1, %v658_v3 }
  0xa4   :  { %v90_v35 = vadd.s32 %v89_v33, %v84_v32 }
  0xa6   :  { %v96_v36 = vadd.s32 %v95_v34, %v90_v35  ;;  %v410_v43 = vpop.permute.xlu2 %409 }
  0xa7   :  { %vm411_vm4 = vcmp.eq.s32.totalorder %v873_v55, %v410_v43 }
  0xa8   :  { %v97_v37 = vcvt.s32.f32 %v96_v36  ;;  %v412_v56 = vsel %vm411_vm4, 1, %v658_v3 }
  0xaa   :  { %v392_v38 = vpop.permute.xlu1 %391  ;;  %v98_v39 = vpack.c.bf16 %v97_v37, %v97_v37  ;;  %v428_v57 = vpop.permute.xlu0 %427 }
  0xab   :  { %vm393_vm0 = vcmp.eq.s32.totalorder %v873_v55, %v392_v38  ;;  %vm429_vm9 = vcmp.eq.s32.totalorder %v873_v55, %v428_v57 }
  0xac   :  { %155 = vmatmul.bf16.vlgmr.msra.gmra.mxu0 %v98_v39  ;;  %216 = vmatmul.bf16.vlgmr.msra.gmra.mxu1 %v98_v39  ;;  %v394_v45 = vsel %vm393_vm0, 1, %v658_v3  ;;  %v430_v5 = vsel %vm429_vm9, 1, %v658_v3  ;;  %vm221_vm0 = vcmask 261120  }
  0xad   :  { %v395_v48 = vadd.s32 %v394_v45, %v389_v46 }
  0xaf   :  { %v323_v52 = vpop.permute.xlu2 %322  ;;  %v401_v53 = vadd.s32 %v400_v49, %v395_v48 }
  0xb0   :  { %vm324_vm11 = vcmp.eq.s32.totalorder %v873_v55, %v323_v52 }
  0xb1   :  { %v325_v9 = vsel %vm324_vm11, 1, %v658_v3 }
  0xb3   :  { %v404_v41 = vpop.permute.xlu1 %403 }
  0xb4   :  { %vm405_vm3 = vcmp.eq.s32.totalorder %v873_v55, %v404_v41 }
  0xb5   :  { %v406_v51 = vsel %vm405_vm3, 1, %v658_v3  ;;  %vm464_vm3 = vcmask 1048320  }
  0xb6   :  { %v407_v54 = vadd.s32 %v406_v51, %v401_v53 }
  0xb8   :  { %v413_v60 = vadd.s32 %v412_v56, %v407_v54  ;;  %v329_v2 = vpop.permute.xlu2 %328 }
  0xb9   :  { %vm330_vm12 = vcmp.eq.s32.totalorder %v873_v55, %v329_v2 }
  0xba   :  { %v331_v14 = vsel %vm330_vm12, 1, %v658_v3 }
  0xbc   :  { %v311_v44 = vpop.permute.xlu1 %310 }
  0xbd   :  { %vm312_vm5 = vcmp.eq.s32.totalorder %v873_v55, %v311_v44 }
  0xbe   :  { %v313_v58 = vsel %vm312_vm5, 1, %v658_v3 }
  0xbf   :  { %v314_v63 = vadd.s32 %v313_v58, %v308_v61 }
  0xc1   :  { %v320_v7 = vadd.s32 %v319_v1, %v314_v63  ;;  %v341_v15 = vpop.permute.xlu2 %340 }
  0xc2   :  { %vm342_vm14 = vcmp.eq.s32.totalorder %v873_v55, %v341_v15 }
  0xc3   :  { %v326_v11 = vadd.s32 %v325_v9, %v320_v7  ;;  %v343_v19 = vsel %vm342_vm14, 1, %v658_v3 }
  0xc5   :  { %v416_v50 = vpop.permute.xlu1 %415  ;;  %v332_v17 = vadd.s32 %v331_v14, %v326_v11 }
  0xc6   :  { %vm417_vm6 = vcmp.eq.s32.totalorder %v873_v55, %v416_v50 }
  0xc7   :  { %v418_v59 = vsel %vm417_vm6, 1, %v658_v3 }
  0xc8   :  { %v419_v0 = vadd.s32 %v418_v59, %v413_v60 }
  0xce   :  { %v422_v62 = vpop.permute.xlu1 %421 }
  0xcf   :  { %vm423_vm10 = vcmp.eq.s32.totalorder %v873_v55, %v422_v62 }
  0xd0   :  { %v424_v4 = vsel %vm423_vm10, 1, %v658_v3 }
  0xd1   :  { %v425_v6 = vadd.s32 %v424_v4, %v419_v0 }
  0xd3   :  { %v431_v8 = vadd.s32 %v430_v5, %v425_v6 }
  0xd5   :  { %v432_v10 = vcvt.s32.f32 %v431_v8 }
  0xd7   :  { %v433_v12 = vpack.c.bf16 %v432_v10, %v432_v10  ;;  %v335_v13 = vpop.permute.xlu1 %334 }
  0xd8   :  { %vm336_vm13 = vcmp.eq.s32.totalorder %v873_v55, %v335_v13 }
  0xd9   :  { %442 = vmatmul.bf16.vlgmr.msrb.gmra.mxu2 %v433_v12  ;;  %455 = vmatmul.bf16.vlgmr.msrb.gmra.mxu3 %v433_v12  ;;  %v337_v16 = vsel %vm336_vm13, 1, %v658_v3 }
  0xda   :  { %v338_v18 = vadd.s32 %v337_v16, %v332_v17 }
  0xdc   :  { %v344_v21 = vadd.s32 %v343_v19, %v338_v18 }
  0xe0   :  { %v347_v20 = vpop.permute.xlu1 %346 }
  0xe1   :  { %vm348_vm15 = vcmp.eq.s32.totalorder %v873_v55, %v347_v20 }
  0xe2   :  { %v349_v22 = vsel %vm348_vm15, 1, %v658_v3 }
  0xe3   :  { %v350_v23 = vadd.s32 %v349_v22, %v344_v21 }
  0xe5   :  { %v351_v24 = vcvt.s32.f32 %v350_v23 }
  0xe7   :  { %v352_v25 = vpack.c.bf16 %v351_v24, %v351_v24 }
  0xe9   :  { %361 = vmatmul.bf16.vlgmr.msrb.gmra.mxu0 %v352_v25  ;;  %374 = vmatmul.bf16.vlgmr.msrb.gmra.mxu1 %v352_v25 }
 0x118   :  { %v281_v26 = vpop.f32.mrf.mxu2  ;;  %v294_v27 = vpop.f32.mrf.mxu3 }
 0x119   :  { %v295_v28 = vadd.f32 %v294_v27, %v281_v26 }
 0x11b   :  { %299 = vrot.lane.b32.xlu2 %v295_v28, %s688_s1 }
 0x120   :  { %v283_v29 = vpop.f32.mrf.mxu2  ;;  %v296_v30 = vpop.f32.mrf.mxu3 }
 0x129   :  { %v156_v31 = vpop.f32.mrf.mxu0  ;;  %v217_v32 = vpop.f32.mrf.mxu1 }
 0x12a   :  { %v218_v33 = vadd.f32 %v217_v32, %v156_v31 }
 0x12c   :  { %222 = vst.msk [vmem:[#allocation2] sm:$0xff] %vm221_vm0, %v218_v33 }
 0x131   :  { %v158_v55 = vpop.f32.mrf.mxu0  ;;  %v219_v34 = vpop.f32.mrf.mxu1 }
 0x15c   :  { %v443_v3 = vpop.f32.mrf.mxu2  ;;  %v456_v35 = vpop.f32.mrf.mxu3 }
 0x15d   :  { %v457_v36 = vadd.f32 %v456_v35, %v443_v3 }
 0x15f   :  { %461 = vrot.lane.b32.xlu1 %v457_v36, %s689_s2 }
 0x164   :  { %v445_v37 = vpop.f32.mrf.mxu2  ;;  %v458_v38 = vpop.f32.mrf.mxu3 }
 0x166   :  { %v362_v39 = vpop.f32.mrf.mxu0  ;;  %v375_v40 = vpop.f32.mrf.mxu1 }
 0x167   :  { %v376_v41 = vadd.f32 %v375_v40, %v362_v39 }
 0x169   :  { %380 = vrot.lane.b32.xlu0 %v376_v41, %s690_s17 }
 0x16e   :  { %v364_v42 = vpop.f32.mrf.mxu0  ;;  %v377_v43 = vpop.f32.mrf.mxu1 }
 0x175   :  { %v300_v44 = vpop.permute.xlu2 %299 }
 0x176   :  { %303 = vst.msk [vmem:[#allocation2] sm:$0xff] %vm302_vm1, %v300_v44 }
 0x1d1   :  { %v462_v46 = vpop.permute.xlu1 %461 }
 0x1db   :  { %v381_v45 = vpop.permute.xlu0 %380 }
 0x1dc   :  { %384 = vst.msk [vmem:[#allocation2] sm:$0xff] %vm383_vm2, %v381_v45 }
 0x1dd   :  { %465 = vst.msk [vmem:[#allocation2] sm:$0xff] %vm464_vm3, %v462_v46 }
 0x1de   :  { %476 = dma.vmem_to_hbm [thread:$0]  %s472_s19, 128, %s474_s22, [#allocation3]  }
 0x1df   :  { %654 = dma.done.wait [#allocation3], 128  }
 0x1e0   :  { %655 = vsyncadd [#allocation3], 4294967168 }
 0x1e1   :  { %481 = vsyncpa [#allocation3], 1 }

</bundles_post_ra>
